<compile_context>
chip_gen: v7x
topology: tpu7x:2x2x1
jax: 0.10.0
libtpu: 0.0.40
codegen_flags: <defaults>
</compile_context>

<pallas_src>
import functools

import jax
import jax.numpy as jnp
from jax.experimental import pallas as pl
from jax.experimental.pallas import tpu as pltpu

_LANE = 128


def _pred_embed_kernel(
    x_ref,        # (TILE_B, S) f32 (cast to bf16 in-kernel)
    wcat_ref,     # (S, dim2p + dim3p) bf16 : [a1 * folded embed_proj[0] | raw_proj[0]]
    bcat_ref,     # (1, dim2p + dim3p) f32
    w2_ref,       # (dim2p, dim3p) bf16     : a2 * (g1-folded embed_proj[3])
    b2_ref,       # (1, dim3p) f32
    wcr_ref,      # (1, dim3p) f32          : pred_comb weight, raw half
    wce_ref,      # (1, dim3p) f32          : pred_comb weight, embed half (g2 folded)
    bc_ref,       # (1, 1) f32 SMEM         : pred_comb bias (t2 folded)
    out_ref,      # (TILE_B, 1) f32
    *, dim2p,
):
    f32 = jnp.float32
    x = x_ref[...].astype(jnp.bfloat16)

    # One fused MXU pass for [encoder+embed_proj[0]] and raw_proj[0]: both share
    # the LHS x with tiny K=S, so a single push halves weight-load/drain
    # overhead.  ReLU applies to both halves.
    z = jnp.dot(x, wcat_ref[...], preferred_element_type=f32) + bcat_ref[...]
    z = jnp.maximum(z, 0.0)
    h1 = jnp.tanh(z[:, :dim2p])          # DyTanh(dim2): alpha folded into wcat/bcat,
    r = z[:, dim2p:]                     # gamma/beta folded into w2/b2

    # embed_proj[3]: Linear(dim2, dim3) -> ReLU -> DyTanh(dim3)
    h2 = jnp.dot(h1.astype(jnp.bfloat16), w2_ref[...],
                 preferred_element_type=f32) + b2_ref[...]
    h2 = jnp.tanh(jnp.maximum(h2, 0.0))  # alpha folded into w2/b2; gamma/beta into wce/bc

    # pred_comb Linear(2*dim3, 1) -> ReLU as VPU multiply + XLU lane reduction
    # (zero-padded dim3 columns contribute exactly 0).
    pred = jnp.sum(r * wcr_ref[...] + h2 * wce_ref[...],
                   axis=-1, keepdims=True) + bc_ref[0, 0]
    # NOTE: last-dim-1 output -> masked stores; tiny write volume, acceptable.
    out_ref[...] = jnp.maximum(pred, 0.0)


def init_params(key, seq_len, embed_dim):
    """Raw (torch-layout) parameters, mirroring the module's initialization."""
    dim1 = seq_len * embed_dim
    dim2, dim3 = dim1 // 2, dim1 // 4
    ks = jax.random.split(key, 10)

    def linear(kw, kb, fan_in, fan_out, w_std=None):
        bound = 1.0 / float(fan_in) ** 0.5
        if w_std is not None:
            w = w_std * jax.random.normal(kw, (fan_out, fan_in), jnp.float32)
        else:
            w = jax.random.uniform(kw, (fan_out, fan_in), jnp.float32, -bound, bound)
        b = jax.random.uniform(kb, (fan_out,), jnp.float32, -bound, bound)
        return w, b

    # synthetic encoder: per-position Linear(1, embed_dim), default torch init
    w_enc, b_enc = linear(ks[0], ks[1], 1, embed_dim)            # (E,1), (E,)
    w1, b1 = linear(ks[2], ks[3], dim1, dim2, w_std=1e-3)        # embed_proj[0]
    w2, b2 = linear(ks[4], ks[5], dim2, dim3, w_std=1e-3)        # embed_proj[3]
    wr, br = linear(ks[6], ks[7], seq_len, dim3, w_std=1e-3)     # raw_proj[0]
    wc, bc = linear(ks[8], ks[9], 2 * dim3, 1, w_std=1e-3)       # pred_comb[0]

    return dict(
        w_enc=w_enc[:, 0], b_enc=b_enc,
        w1=w1, b1=b1,
        g1=jnp.ones((dim2,), jnp.float32), t1=jnp.zeros((dim2,), jnp.float32),
        a1=jnp.asarray(0.5, jnp.float32),
        w2=w2, b2=b2,
        g2=jnp.ones((dim3,), jnp.float32), t2=jnp.zeros((dim3,), jnp.float32),
        a2=jnp.asarray(0.5, jnp.float32),
        wr=wr, br=br, wc=wc, bc=bc,
    )


def prepare_kernel_params(p, *, seq_len, embed_dim):
    """One-time constant folding + padding + layout/dtype prep for the kernel."""
    S, E = seq_len, embed_dim
    dim1 = S * E
    dim2, dim3 = dim1 // 2, dim1 // 4
    dim2p = -(-dim2 // _LANE) * _LANE
    dim3p = -(-dim3 // _LANE) * _LANE

    a1 = float(p["a1"])
    a2 = float(p["a2"])
    # relu(a*z) == a*relu(z) only for a > 0 (DyTanh default alpha=0.5 qualifies).
    assert a1 > 0.0 and a2 > 0.0, "alpha fold requires positive DyTanh alpha"

    f32, bf16 = jnp.float32, jnp.bfloat16

    def padcols(m, n):
        return jnp.pad(m, ((0, 0), (0, n - m.shape[1])))

    def padvec(v, n):
        return jnp.pad(v, (0, n - v.shape[0]))

    # Fold encoder Linear(1,E) + flatten into embed_proj[0]'s Linear(dim1, dim2),
    # then fold DyTanh alpha1 in.
    w1t = p["w1"].T                                              # (dim1, dim2)
    w1e = jnp.einsum("e,sed->sd", p["w_enc"], w1t.reshape(S, E, dim2))  # (S, dim2)
    b1e = jnp.tile(p["b_enc"], S) @ w1t + p["b1"]                # (dim2,)
    w1e = a1 * w1e
    b1e = a1 * b1e

    # raw_proj Linear(S, dim3), zero-padded output cols to lane multiple.
    wr = padcols(p["wr"].T, dim3p)                               # (S, dim3p)
    br = padvec(p["br"], dim3p)

    # One column-concatenated first-layer weight: both matmuls share LHS x.
    w_cat = jnp.concatenate([padcols(w1e, dim2p), wr], axis=1)   # (S, dim2p+dim3p)
    b_cat = jnp.concatenate([padvec(b1e, dim2p), br])            # (dim2p+dim3p,)

    # embed_proj[3]: fold DyTanh(dim2) affine (g1, t1) and alpha2 forward; pad.
    w2t = p["w2"].T                                              # (dim2, dim3)
    w2f = a2 * (p["g1"][:, None] * w2t)
    b2f = a2 * (p["t1"] @ w2t + p["b2"])
    w2f = jnp.pad(w2f, ((0, dim2p - dim2), (0, dim3p - dim3)))
    b2f = padvec(b2f, dim3p)

    # pred_comb: split weight into [raw | embed] halves; fold DyTanh(dim3) affine.
    wc = p["wc"][0]                                              # (2*dim3,)
    wcr = padvec(wc[:dim3], dim3p)
    wce_raw = wc[dim3:]
    wce = padvec(p["g2"] * wce_raw, dim3p)
    bcf = p["bc"][0] + jnp.dot(p["t2"], wce_raw)

    return dict(
        w_cat=w_cat.astype(bf16), b_cat=b_cat[None, :].astype(f32),
        w2=w2f.astype(bf16), b2=b2f[None, :].astype(f32),
        wcr=wcr[None, :].astype(f32), wce=wce[None, :].astype(f32),
        bc=jnp.reshape(bcf, (1, 1)).astype(f32),
    )


@functools.partial(jax.jit, static_argnames=("seq_len", "embed_dim"))
def pred_embed_forward(x, kp, *, seq_len, embed_dim):
    B = x.shape[0]
    S = seq_len
    dim2p, dim3p = kp["w2"].shape
    dcat = dim2p + dim3p

    # Batch tile: bigger tiles amortize the ~0.35 us per-grid-step cost; small
    # batches round up to a sublane multiple (ragged last tile is masked).
    if B >= 1024:
        tile_b = 512
    elif B >= 256:
        tile_b = 256
    elif B >= 128:
        tile_b = 128
    else:
        tile_b = ((B + 7) // 8) * 8
    grid = (pl.cdiv(B, tile_b),)

    # X.squeeze(-1); stays f32 — no wrapper-side pad / bf16-cast HBM passes.
    x2d = x.reshape(B, S)

    vmem = pltpu.MemorySpace.VMEM
    smem = pltpu.MemorySpace.SMEM

    def resident(shape):
        # Constant-index weights: single buffer, never re-fetched across the grid.
        return pl.BlockSpec(shape, lambda i, _n=len(shape): (0,) * _n,
                            memory_space=vmem, pipeline_mode=pl.Buffered(1))

    # Explicit VMEM budget: single-buffered weights + double-buffered x/out
    # tiles + f32/bf16 intermediates + ~30% headroom (scoped defaults are only
    # 16 MiB on v5e / 32 MiB on v6e-v7x).  Capped at v7x's 64 MiB per TC.
    weight_bytes = (S * dcat + dim2p * dim3p) * 2 + (dcat + 3 * dim3p + 2) * 4
    io_bytes = 2 * tile_b * S * 4 + 2 * tile_b * 4
    inter_bytes = tile_b * dcat * 6 + tile_b * dim3p * 8 + tile_b * S * 2
    vmem_limit = int(1.3 * (weight_bytes + io_bytes + inter_bytes)) + (2 << 20)
    vmem_limit = max(8 << 20, min(vmem_limit, 64 << 20))

    out = pl.pallas_call(
        functools.partial(_pred_embed_kernel, dim2p=dim2p),
        out_shape=jax.ShapeDtypeStruct((B, 1), jnp.float32),
        grid=grid,
        in_specs=[
            pl.BlockSpec((tile_b, S), lambda i: (i, 0), memory_space=vmem),   # x
            resident((S, dcat)), resident((1, dcat)),                         # w_cat, b_cat
            resident((dim2p, dim3p)), resident((1, dim3p)),                   # w2, b2
            resident((1, dim3p)), resident((1, dim3p)),                       # wcr, wce
            pl.BlockSpec((1, 1), lambda i: (0, 0), memory_space=smem),        # bc
        ],
        out_specs=pl.BlockSpec((tile_b, 1), lambda i: (i, 0), memory_space=vmem),
        compiler_params=pltpu.CompilerParams(
            dimension_semantics=("parallel",),           # megacore split on v7x
            vmem_limit_bytes=vmem_limit),
    )(x2d, kp["w_cat"], kp["b_cat"], kp["w2"], kp["b2"],
      kp["wcr"], kp["wce"], kp["bc"])
    return out


def pred_embed_reference(x, p, *, seq_len, embed_dim):
    """Pure-JAX f32 reference mirroring the torch forward (no folding)."""
    B = x.shape[0]
    emb = x * p["w_enc"][None, None, :] + p["b_enc"][None, None, :]     # encoder(X)
    emb = emb.reshape(B, seq_len * embed_dim)                           # flatten(start_dim=1)
    h1 = jnp.maximum(emb @ p["w1"].T + p["b1"], 0.0)
    h1 = p["g1"] * jnp.tanh(p["a1"] * h1) + p["t1"]
    h2 = jnp.maximum(h1 @ p["w2"].T + p["b2"], 0.0)
    h2 = p["g2"] * jnp.tanh(p["a2"] * h2) + p["t2"]
    r = jnp.maximum(x[..., 0] @ p["wr"].T + p["br"], 0.0)
    comb = jnp.concatenate([r, h2], axis=-1)
    return jnp.maximum(comb @ p["wc"].T + p["bc"], 0.0)


if __name__ == "__main__":
    seq_len, embed_dim, batch = 8, 32, 2
    key = jax.random.PRNGKey(0)
    k_param, k_x = jax.random.split(key)

    raw_params = init_params(k_param, seq_len, embed_dim)
    kernel_params = prepare_kernel_params(raw_params, seq_len=seq_len, embed_dim=embed_dim)
    x = jax.random.normal(k_x, (batch, seq_len, 1), jnp.float32)

    out = pred_embed_forward(x, kernel_params, seq_len=seq_len, embed_dim=embed_dim)
    out = jax.block_until_ready(out)

    ref = pred_embed_reference(x, raw_params, seq_len=seq_len, embed_dim=embed_dim)
    assert out.shape == (batch, 1)
    # bf16 matmul operands vs pure-f32 reference -> loosened tolerance.
    assert jnp.allclose(out, ref, atol=2e-3, rtol=2e-2), (out, ref)
    print("KERNEL_OK")
</pallas_src>

<mosaic_0001>
module attributes {stable_mosaic.version = 11 : i64} {
  func.func @_pred_embed_kernel(%arg0: i32, %arg1: memref<8x8xf32, #tpu.memory_space<vmem>>, %arg2: memref<8x256xbf16, #tpu.memory_space<vmem>>, %arg3: memref<1x256xf32, #tpu.memory_space<vmem>>, %arg4: memref<128x128xbf16, #tpu.memory_space<vmem>>, %arg5: memref<1x128xf32, #tpu.memory_space<vmem>>, %arg6: memref<1x128xf32, #tpu.memory_space<vmem>>, %arg7: memref<1x128xf32, #tpu.memory_space<vmem>>, %arg8: memref<1x1xf32, #tpu.memory_space<smem>>, %arg9: memref<8x1xf32, #tpu.memory_space<vmem>>) attributes {dimension_semantics = [#tpu.dimension_semantics<parallel>], iteration_bounds = array<i64: 1>, scalar_prefetch = 0 : i64, scratch_operands = 0 : i64, tpu.core_type = #tpu.core_type<tc>, window_params = [{transform_indices = @transform_0, window_bounds = array<i64: 8, 8>}, {pipeline_mode = #tpu.pipeline_mode<synchronous>, transform_indices = @transform_1, window_bounds = array<i64: 8, 256>}, {pipeline_mode = #tpu.pipeline_mode<synchronous>, transform_indices = @transform_2, window_bounds = array<i64: 1, 256>}, {pipeline_mode = #tpu.pipeline_mode<synchronous>, transform_indices = @transform_3, window_bounds = array<i64: 128, 128>}, {pipeline_mode = #tpu.pipeline_mode<synchronous>, transform_indices = @transform_4, window_bounds = array<i64: 1, 128>}, {pipeline_mode = #tpu.pipeline_mode<synchronous>, transform_indices = @transform_5, window_bounds = array<i64: 1, 128>}, {pipeline_mode = #tpu.pipeline_mode<synchronous>, transform_indices = @transform_6, window_bounds = array<i64: 1, 128>}, {transform_indices = @transform_7, window_bounds = array<i64: 1, 1>}, {transform_indices = @transform_8, window_bounds = array<i64: 8, 1>}]} {
    %c0 = arith.constant 0 : index
    %c0_0 = arith.constant 0 : index
    %0 = vector.load %arg1[%c0, %c0_0] : memref<8x8xf32, #tpu.memory_space<vmem>>, vector<8x8xf32>
    %1 = arith.truncf %0 : vector<8x8xf32> to vector<8x8xbf16>
    %c0_1 = arith.constant 0 : index
    %c0_2 = arith.constant 0 : index
    %2 = vector.load %arg2[%c0_1, %c0_2] : memref<8x256xbf16, #tpu.memory_space<vmem>>, vector<8x256xbf16>
    %cst = arith.constant dense<0.000000e+00> : vector<8x256xf32>
    %3 = tpu.matmul %1, %2, %cst {dimension_numbers = #tpu.dot_dimension_numbers<[1], [0], [0], [1], [0, 0, 1, 1], [], []>} : vector<8x8xbf16>, vector<8x256xbf16>, vector<8x256xf32> -> vector<8x256xf32>
    %c0_3 = arith.constant 0 : index
    %c0_4 = arith.constant 0 : index
    %4 = vector.load %arg3[%c0_3, %c0_4] : memref<1x256xf32, #tpu.memory_space<vmem>>, vector<1x256xf32>
    %5 = vector.broadcast %4 : vector<1x256xf32> to vector<8x256xf32>
    %6 = arith.addf %3, %5 : vector<8x256xf32>
    %cst_5 = arith.constant 0.000000e+00 : f32
    %7 = vector.broadcast %cst_5 : f32 to vector<8x256xf32>
    %8 = arith.maximumf %6, %7 : vector<8x256xf32>
    %9 = vector.extract_strided_slice %8 {offsets = [0, 0], sizes = [8, 128], strides = [1, 1]} : vector<8x256xf32> to vector<8x128xf32>
    %10 = math.tanh %9 : vector<8x128xf32>
    %11 = vector.extract_strided_slice %8 {offsets = [0, 128], sizes = [8, 128], strides = [1, 1]} : vector<8x256xf32> to vector<8x128xf32>
    %12 = arith.truncf %10 : vector<8x128xf32> to vector<8x128xbf16>
    %c0_6 = arith.constant 0 : index
    %c0_7 = arith.constant 0 : index
    %13 = vector.load %arg4[%c0_6, %c0_7] : memref<128x128xbf16, #tpu.memory_space<vmem>>, vector<128x128xbf16>
    %cst_8 = arith.constant dense<0.000000e+00> : vector<8x128xf32>
    %14 = tpu.matmul %12, %13, %cst_8 {dimension_numbers = #tpu.dot_dimension_numbers<[1], [0], [0], [1], [0, 0, 1, 1], [], []>} : vector<8x128xbf16>, vector<128x128xbf16>, vector<8x128xf32> -> vector<8x128xf32>
    %c0_9 = arith.constant 0 : index
    %c0_10 = arith.constant 0 : index
    %15 = vector.load %arg5[%c0_9, %c0_10] : memref<1x128xf32, #tpu.memory_space<vmem>>, vector<1x128xf32>
    %16 = vector.broadcast %15 : vector<1x128xf32> to vector<8x128xf32>
    %17 = arith.addf %14, %16 : vector<8x128xf32>
    %cst_11 = arith.constant 0.000000e+00 : f32
    %18 = vector.broadcast %cst_11 : f32 to vector<8x128xf32>
    %19 = arith.maximumf %17, %18 : vector<8x128xf32>
    %20 = math.tanh %19 : vector<8x128xf32>
    %c0_12 = arith.constant 0 : index
    %c0_13 = arith.constant 0 : index
    %21 = vector.load %arg6[%c0_12, %c0_13] : memref<1x128xf32, #tpu.memory_space<vmem>>, vector<1x128xf32>
    %22 = vector.broadcast %21 : vector<1x128xf32> to vector<8x128xf32>
    %23 = arith.mulf %11, %22 : vector<8x128xf32>
    %c0_14 = arith.constant 0 : index
    %c0_15 = arith.constant 0 : index
    %24 = vector.load %arg7[%c0_14, %c0_15] : memref<1x128xf32, #tpu.memory_space<vmem>>, vector<1x128xf32>
    %25 = vector.broadcast %24 : vector<1x128xf32> to vector<8x128xf32>
    %26 = arith.mulf %20, %25 : vector<8x128xf32>
    %27 = arith.addf %23, %26 : vector<8x128xf32>
    %cst_16 = arith.constant dense<0.000000e+00> : vector<8xf32>
    %28 = vector.multi_reduction <add>, %27, %cst_16 [1] : vector<8x128xf32> to vector<8xf32>
    %29 = vector.shape_cast %28 : vector<8xf32> to vector<8x1xf32>
    %c0_17 = arith.constant 0 : index
    %c0_18 = arith.constant 0 : index
    %30 = memref.load %arg8[%c0_17, %c0_18] : memref<1x1xf32, #tpu.memory_space<smem>>
    %31 = vector.broadcast %30 : f32 to vector<8x1xf32>
    %32 = arith.addf %29, %31 : vector<8x1xf32>
    %cst_19 = arith.constant 0.000000e+00 : f32
    %33 = vector.broadcast %cst_19 : f32 to vector<8x1xf32>
    %34 = arith.maximumf %32, %33 : vector<8x1xf32>
    %c0_20 = arith.constant 0 : index
    %c0_21 = arith.constant 0 : index
    %35 = vector.load %arg9[%c0_20, %c0_21] : memref<8x1xf32, #tpu.memory_space<vmem>>, vector<8x1xf32>
    tpu.vector_store %arg9[%c0_20, %c0_21], %34 {strides = array<i32>} : memref<8x1xf32, #tpu.memory_space<vmem>>, vector<8x1xf32>,
    return
  }
  func.func @transform_0(%arg0: i32) -> (i32, i32) {
    %c0_i32 = arith.constant 0 : i32
    %c0_i32_0 = arith.constant 0 : i32
    return %arg0, %c0_i32 : i32, i32
  }
  func.func @transform_1(%arg0: i32) -> (i32, i32) {
    %c0_i32 = arith.constant 0 : i32
    %c0_i32_0 = arith.constant 0 : i32
    %c0_i32_1 = arith.constant 0 : i32
    return %c0_i32, %c0_i32_0 : i32, i32
  }
  func.func @transform_2(%arg0: i32) -> (i32, i32) {
    %c0_i32 = arith.constant 0 : i32
    %c0_i32_0 = arith.constant 0 : i32
    %c0_i32_1 = arith.constant 0 : i32
    return %c0_i32, %c0_i32_0 : i32, i32
  }
  func.func @transform_3(%arg0: i32) -> (i32, i32) {
    %c0_i32 = arith.constant 0 : i32
    %c0_i32_0 = arith.constant 0 : i32
    %c0_i32_1 = arith.constant 0 : i32
    return %c0_i32, %c0_i32_0 : i32, i32
  }
  func.func @transform_4(%arg0: i32) -> (i32, i32) {
    %c0_i32 = arith.constant 0 : i32
    %c0_i32_0 = arith.constant 0 : i32
    %c0_i32_1 = arith.constant 0 : i32
    return %c0_i32, %c0_i32_0 : i32, i32
  }
  func.func @transform_5(%arg0: i32) -> (i32, i32) {
    %c0_i32 = arith.constant 0 : i32
    %c0_i32_0 = arith.constant 0 : i32
    %c0_i32_1 = arith.constant 0 : i32
    return %c0_i32, %c0_i32_0 : i32, i32
  }
  func.func @transform_6(%arg0: i32) -> (i32, i32) {
    %c0_i32 = arith.constant 0 : i32
    %c0_i32_0 = arith.constant 0 : i32
    %c0_i32_1 = arith.constant 0 : i32
    return %c0_i32, %c0_i32_0 : i32, i32
  }
  func.func @transform_7(%arg0: i32) -> (i32, i32) {
    %c0_i32 = arith.constant 0 : i32
    %c0_i32_0 = arith.constant 0 : i32
    %c0_i32_1 = arith.constant 0 : i32
    return %c0_i32, %c0_i32_0 : i32, i32
  }
  func.func @transform_8(%arg0: i32) -> (i32, i32) {
    %c0_i32 = arith.constant 0 : i32
    %c0_i32_0 = arith.constant 0 : i32
    return %arg0, %c0_i32 : i32, i32
  }
}

</mosaic_0001>

<bundles_post_ra>
// kernel: pred_embed_forward.1
= control target key start
LH: loop header
LB: loop body
LE: loop exit
PB: predicated region body
PF: predicated region fallthrough
CT: control target
= control target key end

     0   :  { %14 = vsyncpa [#allocation4], 0  ;;  %s387_s27 = smov [#allocation3]   ;;  %s474_s0 = inlined_call_operand.vmem [shape: f32[2,8], index: 0, kind: input, shape index: {}]   ;;  %s475_s1 = inlined_call_operand.vmem [shape: bf16[8,256], index: 1, kind: input, shape index: {}]   ;;  %s476_s2 = inlined_call_operand.vmem [shape: f32[1,256], index: 2, kind: input, shape index: {}]   ;;  %s477_s3 = inlined_call_operand.hbm [shape: bf16[128,128], index: 3, kind: input, shape index: {}]   ;;  %s478_s4 = inlined_call_operand.vmem [shape: f32[1,128], index: 4, kind: input, shape index: {}]   ;;  %s479_s5 = inlined_call_operand.vmem [shape: f32[1,128], index: 5, kind: input, shape index: {}]   ;;  %s480_s6 = inlined_call_operand.vmem [shape: f32[1,128], index: 6, kind: input, shape index: {}]   ;;  %s481_s7 = inlined_call_operand.<no memory space> [shape: f32[1,1], index: 7, kind: input, shape index: {}]   ;;  %s482_s8 = inlined_call_operand.vmem [shape: f32[2,1], index: 8, kind: output, shape index: {}]  }
   0x1   :  { %s26_s28 = sshll.u32 %s387_s27, 4  ;;  %s363_s9 = scalar_lea.hbm %s477_s3, 1024  ;;  %s27_s28 = int_to_ptr.vmem [resolvable:$true] %s26_s28 }
   0x2   :  { %p364_p0 = scmp.ne.s32.totalorder %s477_s3, %s363_s9  ;;  %p367_p1 = scmp.lt.u32.totalorder %s363_s9, %s477_s3 }
   0x4   :  { %p369_p2 = pnand %p367_p1, %p364_p0 }
   0x6   :  { %372 = shalt.err (!%p369_p2)
}
   0x7   :  { %s373_s14 = scalar_lea.vmem %s27_s28, 1024  ;;  %p378_p4 = scmp.lt.s32.totalorder %s27_s28, %s27_s28 }
   0x8   :  { %p374_p3 = scmp.ne.s32.totalorder %s27_s28, %s373_s14  ;;  %p379_p5 = scmp.lt.s32.totalorder %s373_s14, %s373_s14 }
   0xa   :  { %p380_p6 = por %p379_p5, %p378_p4 }
   0xc   :  { %p381_p7 = pnand %p380_p6, %p374_p3 }
   0xe   :  { %384 = shalt.err (!%p381_p7)
}
   0xf   :  { %s388_s15 = smov 64   ;;  %s389_s16 = smov 4  }
  0x10   :  { %32 = dma.hbm_to_vmem [thread:$0]  %s477_s3, 1024, %s27_s28, [#allocation4], %s388_s15, %s388_s15, %s389_s16  }
  0x11   :  { %385 = dma.done.wait [#allocation4], 1024  }
  0x12   :  { %386 = vsyncadd [#allocation4], 4294966272  ;;  %v390_v0 = vmov 0   ;;  %v391_v1 = vmov 0.0   ;;  %v47_v2 = vld [vmem:[%s475_s1] sm:$0xff]  ;;  %vm69_vm0 = vcmask 1043456   ;;  %v50_v16 = vlaneseq }
  0x13   :  { %108 = vmatprep.mubr.bf16.mxu0 %v390_v0  ;;  %323 = vmatprep.subr.bf16.mxu1 %v391_v1  ;;  %v45_v3 = vld [vmem:[%s474_s0] sm:$0xff]  ;;  %v300_v4 = vcombine.high %v47_v2, %v47_v2  ;;  %v299_v5 = vcombine.low %v47_v2, %v47_v2  ;;  %v352_v9 = vld [vmem:[#allocation3 + $0x8] sm:$0xff]   ;;  %vm65_vm1 = vcmask 64512   ;;  %v353_v10 = vld [vmem:[#allocation3 + $0x10] sm:$0xff]   ;;  %vm392_vm2 = vmmov 0  }
  0x14   :  { %v351_v6 = vld [vmem:[#allocation3] sm:$0xff]   ;;  %v46_v8 = vpack.c.bf16 %v45_v3, %v45_v3  ;;  %v354_v11 = vld [vmem:[#allocation3 + $0x18] sm:$0xff]   ;;  %v356_v13 = vld [vmem:[#allocation3 + $0x28] sm:$0xff]   ;;  %339 = vmatprep.mubr.msk.bf16.mxu1 %vm392_vm2, %v391_v1  ;;  %v51_v17 = vshrl.u32 %v50_v16, 7  ;;  %v254_v46 = vstv %s481_s7  ;;  %vm257_vm3 = vcmask 7168  }
  0x15   :  { %301 = vmatprep.subr.msk.bf16.mxu0 %vm69_vm0, %v300_v4  ;;  %v71_v7 = vsel %vm69_vm0, %v299_v5, 0  ;;  %324 = vmatpush3.bf16.msra.mxu1 %v351_v6  ;;  %v355_v12 = vld [vmem:[#allocation3 + $0x20] sm:$0xff]   ;;  %v357_v14 = vld [vmem:[#allocation3 + $0x30] sm:$0xff]   ;;  %v358_v15 = vld [vmem:[#allocation3 + $0x38] sm:$0xff]  }
  0x16   :  { %77 = vmatpush1.bf16.msra.mxu0 %v71_v7  ;;  %325 = vmatprep.subr.bf16.mxu1 %v391_v1  ;;  %v52_v18 = vsub.s32 0, %v51_v17  ;;  %v48_v19 = vld [vmem:[%s476_s2] sm:$0x3]  ;;  %v56_v30 = vsub.s32 1, %v51_v17 }
  0x17   :  { %v303_v29 = vld [vmem:[%s478_s4] ss:$0 sm:$0xff] }
  0x18   :  { %v53_v20 = vrot.slane %v48_v19, %v52_v18  ;;  %v57_v37 = vrot.slane %v48_v19, %v56_v30  ;;  %v312_v40 = vld [vmem:[%s479_s5] ss:$0 sm:$0xff] }
  0x19   :  { %302 = vmatmul.mubr.msk.bf16.vlgmr.msra.gmra.mrb[0].mxu0 %vm65_vm1, %v46_v8  ;;  %326 = vmatpush3.bf16.msra.mxu1 %v352_v9  ;;  %v313_v41 = vld [vmem:[%s480_s6] ss:$0 sm:$0xff] }
  0x1a   :  { %327 = vmatprep.subr.bf16.mxu1 %v391_v1 }
  0x1d   :  { %328 = vmatpush3.bf16.msra.mxu1 %v353_v10 }
  0x1e   :  { %329 = vmatprep.subr.bf16.mxu1 %v391_v1 }
  0x21   :  { %330 = vmatpush3.bf16.msra.mxu1 %v354_v11 }
  0x22   :  { %331 = vmatprep.subr.bf16.mxu1 %v391_v1 }
  0x25   :  { %332 = vmatpush3.bf16.msra.mxu1 %v355_v12 }
  0x26   :  { %333 = vmatprep.subr.bf16.mxu1 %v391_v1 }
  0x29   :  { %334 = vmatpush3.bf16.msra.mxu1 %v356_v13 }
  0x2a   :  { %335 = vmatprep.subr.bf16.mxu1 %v391_v1 }
  0x2d   :  { %336 = vmatpush3.bf16.msra.mxu1 %v357_v14 }
  0x2e   :  { %337 = vmatprep.subr.bf16.mxu1 %v391_v1 }
  0x31   :  { %338 = vmatpush3.bf16.msra.mxu1 %v358_v15 }
  0xec   :  { %v110_v21 = vpop.f32.mrb[0].mxu0 }
  0xed   :  { %v111_v22 = vadd.f32 %v110_v21, %v53_v20  ;;  %v112_v23 = vpop.f32.mrb[1].mxu0 }
  0xee   :  { %v114_v24 = vpop.f32.mrb[2].mxu0  ;;  %v113_v38 = vadd.f32 %v112_v23, %v57_v37 }
  0xef   :  { %v117_v25 = vmax.f32 %v111_v22, 0.0  ;;  %v115_v26 = vpop.f32.mrb[3].mxu0 }
  0xf0   :  { %v118_v39 = vmax.f32 %v113_v38, 0.0 }
  0xf1   :  { %359 = vtanh.f32 %v117_v25 }
  0xf2   :  { %v241_v43 = vmul.f32 %v312_v40, %v118_v39 }
  0xfb   :  { %v360_v27 = vpop.eup %359 }
  0xfc   :  { %v120_v28 = vpack.c.bf16 %v360_v27, %v360_v27 }
  0xfe   :  { %340 = vmatmul.mubr.bf16.vlgmr.msra.gmra.mrb[0].mxu1 %v120_v28 }
 0x1d1   :  { %v226_v31 = vpop.f32.mrb[0].mxu1 }
 0x1d2   :  { %v227_v32 = vadd.f32 %v303_v29, %v226_v31  ;;  %v341_v33 = vpop.f32.mrb[1].mxu1 }
 0x1d3   :  { %v229_v34 = vpop.f32.mrb[2].mxu1 }
 0x1d4   :  { %v232_v35 = vmax.f32 %v227_v32, 0.0  ;;  %v342_v36 = vpop.f32.mrb[3].mxu1 }
 0x1d6   :  { %361 = vtanh.f32 %v232_v35 }
 0x1e0   :  { %v362_v42 = vpop.eup %361 }
 0x1e1   :  { %v249_v44 = vmul.f32 %v362_v42, %v313_v41 }
 0x1e3   :  { %v250_v45 = vadd.f32 %v249_v44, %v241_v43 }
 0x1e5   :  { %251 = vadd.xlane.f32.xlu0 %v250_v45 }
 0x272   :  { %v252_v47 = vpop.xlane.xlu0 %251 }
 0x273   :  { %v255_v48 = vadd.f32 %v254_v46, %v252_v47 }
 0x275   :  { %v256_v49 = vmax.f32 %v255_v48, 0.0 }
 0x277   :  { %258 = vst.msk [vmem:[#allocation5] sm:$0xff] %vm257_vm3, %v256_v49 }
 0x27e   :  { %v276_v50 = vld [vmem:[#allocation5] sm:$0x3] }
 0x27f   :  { %277 = vst [vmem:[%s482_s8] sm:$0x3] %v276_v50 }
 0x280   :  { %294 = vsyncpa [#allocation4], 1 }

</bundles_post_ra>
